<compile_context>
chip_gen: v7x
topology: tpu7x:2x2x1
jax: 0.10.0
libtpu: 0.0.40
codegen_flags: <defaults>
</compile_context>

<pallas_src>
import functools
import math

import jax
import jax.numpy as jnp
from jax.experimental import pallas as pl
from jax.experimental.pallas import tpu as pltpu

IN_FEATURES = 256   # cfg.backbone.in_features (matches example input)
H1 = 500            # fc1 out
H2 = 300            # fc2 out
H1_PAD = 512        # 4 * 128  (lane-dense)
H2_PAD = 384        # 3 * 128  (lane-dense)
NO_ACTV = False     # cfg.backbone.no_actv


def _round_up(x, m):
    return ((x + m - 1) // m) * m


def _fnn_kernel(x_ref, w1_ref, b1_ref, w2_ref, b2_ref, o_ref, *, apply_final_relu):
    # x_ref: (tm, K) f32  -> cast to bf16 in-kernel (saves a wrapper-side HBM pass)
    # w1_ref: (K, 512) bf16, b1_ref: (1, 512) f32
    # w2_ref: (512, 384) bf16, b2_ref: (1, 384) f32
    # o_ref: (tm, 384) f32 or bf16
    x = x_ref[...].astype(jnp.bfloat16)
    h = jnp.dot(x, w1_ref[...], preferred_element_type=jnp.float32) + b1_ref[...]
    h = jnp.maximum(h, 0.0)                               # ReLU after fc1 (always)
    y = jnp.dot(h.astype(jnp.bfloat16), w2_ref[...],
                preferred_element_type=jnp.float32) + b2_ref[...]
    if apply_final_relu:                                  # ReLU after fc2 iff not no_actv
        y = jnp.maximum(y, 0.0)
    o_ref[...] = y.astype(o_ref.dtype)


def prepare_params(w1, b1, w2, b2):
    """One-time weight prep: pad hidden dims to lane multiples and cast to bf16.

    Hoisted out of the per-call path (perf feedback): call once, reuse forever.
    Padding is numerically inert (zero weights/biases, ReLU(0)=0).
    """
    K = w1.shape[0]
    w1_p = jnp.zeros((K, H1_PAD), jnp.bfloat16).at[:, :H1].set(w1.astype(jnp.bfloat16))
    b1_p = jnp.zeros((1, H1_PAD), jnp.float32).at[:, :H1].set(
        b1.reshape(1, H1).astype(jnp.float32))
    w2_p = jnp.zeros((H1_PAD, H2_PAD), jnp.bfloat16).at[:H1, :H2].set(
        w2.astype(jnp.bfloat16))
    b2_p = jnp.zeros((1, H2_PAD), jnp.float32).at[:, :H2].set(
        b2.reshape(1, H2).astype(jnp.float32))
    return w1_p, b1_p, w2_p, b2_p


@functools.partial(jax.jit, static_argnames=("no_actv", "bf16_out", "slice_output"))
def simple_fnn_forward(x, w1_p, b1_p, w2_p, b2_p, *, no_actv=NO_ACTV,
                       bf16_out=False, slice_output=True):
    """x: any shape whose row-major flatten gives (M, in_features), f32.

    bf16_out:      emit bf16 output (halves the dominant HBM term on v6e/v7x).
    slice_output:  if False, return the lane-padded (M, 384) buffer (cols 300:384
                   are exactly zero) and skip the extra copy pass.
    """
    K = w1_p.shape[0]
    if x.ndim > 2:
        x = x.reshape(-1, K)
    M = x.shape[0]

    # ---- row tiling: no wrapper-side M padding; Pallas masks the ragged edge ----
    if M <= 256:
        tm = _round_up(max(M, 1), 8)            # single step; f32 x -> (8,128) native
    else:
        # >= 2 grid steps so v7x's two TensorCores both engage; cap tm so per-step
        # VMEM (x f32 + f32 h scratch + out, double-buffered) stays well under the
        # 32 MiB scoped default on v7x.
        tm = min(2048, _round_up(pl.cdiv(M, 2), 128))
    grid_m = pl.cdiv(M, tm)

    out_dtype = jnp.bfloat16 if bf16_out else jnp.float32
    out_bytes = 2 if bf16_out else 4

    flops = 2 * M * (K * H1_PAD + H1_PAD * H2_PAD)
    bytes_accessed = (M * K * 4                 # x (f32)
                      + K * H1_PAD * 2 + H1_PAD * 4       # W1 + b1
                      + H1_PAD * H2_PAD * 2 + H2_PAD * 4  # W2 + b2
                      + M * H2_PAD * out_bytes)           # output

    kernel = functools.partial(_fnn_kernel, apply_final_relu=not no_actv)

    out = pl.pallas_call(
        kernel,
        out_shape=jax.ShapeDtypeStruct((M, H2_PAD), out_dtype),
        grid_spec=pltpu.PrefetchScalarGridSpec(
            num_scalar_prefetch=0,
            grid=(grid_m,),
            in_specs=[
                pl.BlockSpec((tm, K), lambda i: (i, 0)),          # x tile (f32)
                pl.BlockSpec((K, H1_PAD), lambda i: (0, 0)),      # W1 (VMEM-resident)
                pl.BlockSpec((1, H1_PAD), lambda i: (0, 0)),      # b1
                pl.BlockSpec((H1_PAD, H2_PAD), lambda i: (0, 0)), # W2 (VMEM-resident)
                pl.BlockSpec((1, H2_PAD), lambda i: (0, 0)),      # b2
            ],
            out_specs=pl.BlockSpec((tm, H2_PAD), lambda i: (i, 0)),
        ),
        compiler_params=pltpu.CompilerParams(
            dimension_semantics=("parallel",),
        ),
        cost_estimate=pl.CostEstimate(flops=flops, transcendentals=0,
                                      bytes_accessed=bytes_accessed),
    )(x, w1_p, b1_p, w2_p, b2_p)

    if slice_output:
        out = out[:, :H2]
    return out


def init_params(key):
    """Deterministic init mimicking nn.Linear's default (Kaiming-uniform / fan_in)."""
    k1, k2, k3, k4 = jax.random.split(key, 4)
    bound1 = 1.0 / math.sqrt(IN_FEATURES)
    bound2 = 1.0 / math.sqrt(H1)
    # Stored as (in, out) == torch weight transposed.
    w1 = jax.random.uniform(k1, (IN_FEATURES, H1), jnp.float32, -bound1, bound1)
    b1 = jax.random.uniform(k2, (H1,), jnp.float32, -bound1, bound1)
    w2 = jax.random.uniform(k3, (H1, H2), jnp.float32, -bound2, bound2)
    b2 = jax.random.uniform(k4, (H2,), jnp.float32, -bound2, bound2)
    return w1, b1, w2, b2


def reference_forward_f32(x, w1, b1, w2, b2, *, no_actv=NO_ACTV):
    """Module semantics in full f32 (loose check vs the bf16-weight kernel)."""
    if x.ndim > 2:
        x = x.reshape(-1, IN_FEATURES)
    h = jnp.maximum(x @ w1 + b1, 0.0)
    y = h @ w2 + b2
    if not no_actv:
        y = jnp.maximum(y, 0.0)
    return y


def reference_forward_bf16(x, w1, b1, w2, b2, *, no_actv=NO_ACTV):
    """Precision-matched reference: bf16 operands, f32 accumulation (tight check)."""
    if x.ndim > 2:
        x = x.reshape(-1, IN_FEATURES)
    xb = x.astype(jnp.bfloat16)
    h = jnp.dot(xb, w1.astype(jnp.bfloat16), preferred_element_type=jnp.float32) + b1
    h = jnp.maximum(h, 0.0)
    y = jnp.dot(h.astype(jnp.bfloat16), w2.astype(jnp.bfloat16),
                preferred_element_type=jnp.float32) + b2
    if not no_actv:
        y = jnp.maximum(y, 0.0)
    return y


if __name__ == "__main__":
    key = jax.random.PRNGKey(0)
    kx, kp, kx2 = jax.random.split(key, 3)

    w1, b1, w2, b2 = init_params(kp)
    # Hoisted one-time weight preparation (perf feedback #1).
    w1_p, b1_p, w2_p, b2_p = prepare_params(w1, b1, w2, b2)

    # Case 1: NCHW-like input (2, 4, 16, 16) -> flattened to (8, 256) rows.
    # Default path: f32 output, sliced to (M, 300) == module semantics.
    x = jax.random.normal(kx, (2, 4, 16, 16), jnp.float32)
    out = jax.block_until_ready(simple_fnn_forward(x, w1_p, b1_p, w2_p, b2_p))
    assert out.shape == (8, H2), out.shape

    ref_bf16 = reference_forward_bf16(x, w1, b1, w2, b2)
    ref_f32 = reference_forward_f32(x, w1, b1, w2, b2)
    assert jnp.allclose(out, ref_bf16, atol=2e-3, rtol=2e-3), \
        float(jnp.max(jnp.abs(out - ref_bf16)))
    assert jnp.allclose(out, ref_f32, atol=1e-1, rtol=1e-1), \
        float(jnp.max(jnp.abs(out - ref_f32)))

    # Case 2: larger, non-tile-multiple batch (exercises multi-step grid + ragged
    # last block), run on the memory-lean path: bf16 output, no column slice.
    x2 = jax.random.normal(kx2, (1000, IN_FEATURES), jnp.float32)
    out2_pad = jax.block_until_ready(
        simple_fnn_forward(x2, w1_p, b1_p, w2_p, b2_p,
                           bf16_out=True, slice_output=False))
    assert out2_pad.shape == (1000, H2_PAD), out2_pad.shape
    assert bool(jnp.all(out2_pad[:, H2:] == 0))          # padded columns exactly zero
    ref2 = reference_forward_bf16(x2, w1, b1, w2, b2)
    out2 = out2_pad[:, :H2].astype(jnp.float32)
    assert jnp.allclose(out2, ref2, atol=2e-2, rtol=2e-2), \
        float(jnp.max(jnp.abs(out2 - ref2)))

    print("KERNEL_OK")
</pallas_src>

<mosaic_0001>
module attributes {stable_mosaic.version = 11 : i64} {
  func.func @_fnn_kernel(%arg0: i32, %arg1: memref<8x256xf32, #tpu.memory_space<vmem>>, %arg2: memref<256x512xbf16, #tpu.memory_space<vmem>>, %arg3: memref<1x512xf32, #tpu.memory_space<vmem>>, %arg4: memref<512x384xbf16, #tpu.memory_space<vmem>>, %arg5: memref<1x384xf32, #tpu.memory_space<vmem>>, %arg6: memref<8x384xf32, #tpu.memory_space<vmem>>) attributes {dimension_semantics = [#tpu.dimension_semantics<parallel>], iteration_bounds = array<i64: 1>, scalar_prefetch = 0 : i64, scratch_operands = 0 : i64, tpu.core_type = #tpu.core_type<tc>, window_params = [{transform_indices = @transform_0, window_bounds = array<i64: 8, 256>}, {pipeline_mode = #tpu.pipeline_mode<synchronous>, transform_indices = @transform_1, window_bounds = array<i64: 256, 512>}, {pipeline_mode = #tpu.pipeline_mode<synchronous>, transform_indices = @transform_2, window_bounds = array<i64: 1, 512>}, {pipeline_mode = #tpu.pipeline_mode<synchronous>, transform_indices = @transform_3, window_bounds = array<i64: 512, 384>}, {pipeline_mode = #tpu.pipeline_mode<synchronous>, transform_indices = @transform_4, window_bounds = array<i64: 1, 384>}, {transform_indices = @transform_5, window_bounds = array<i64: 8, 384>}]} {
    %c0 = arith.constant 0 : index
    %c0_0 = arith.constant 0 : index
    %0 = vector.load %arg1[%c0, %c0_0] : memref<8x256xf32, #tpu.memory_space<vmem>>, vector<8x256xf32>
    %1 = arith.truncf %0 : vector<8x256xf32> to vector<8x256xbf16>
    %c0_1 = arith.constant 0 : index
    %c0_2 = arith.constant 0 : index
    %2 = vector.load %arg2[%c0_1, %c0_2] : memref<256x512xbf16, #tpu.memory_space<vmem>>, vector<256x512xbf16>
    %cst = arith.constant dense<0.000000e+00> : vector<8x512xf32>
    %3 = tpu.matmul %1, %2, %cst {dimension_numbers = #tpu.dot_dimension_numbers<[1], [0], [0], [1], [0, 0, 1, 1], [], []>} : vector<8x256xbf16>, vector<256x512xbf16>, vector<8x512xf32> -> vector<8x512xf32>
    %c0_3 = arith.constant 0 : index
    %c0_4 = arith.constant 0 : index
    %4 = vector.load %arg3[%c0_3, %c0_4] : memref<1x512xf32, #tpu.memory_space<vmem>>, vector<1x512xf32>
    %5 = vector.broadcast %4 : vector<1x512xf32> to vector<8x512xf32>
    %6 = arith.addf %3, %5 : vector<8x512xf32>
    %cst_5 = arith.constant 0.000000e+00 : f32
    %7 = vector.broadcast %cst_5 : f32 to vector<8x512xf32>
    %8 = arith.maximumf %6, %7 : vector<8x512xf32>
    %9 = arith.truncf %8 : vector<8x512xf32> to vector<8x512xbf16>
    %c0_6 = arith.constant 0 : index
    %c0_7 = arith.constant 0 : index
    %10 = vector.load %arg4[%c0_6, %c0_7] : memref<512x384xbf16, #tpu.memory_space<vmem>>, vector<512x384xbf16>
    %cst_8 = arith.constant dense<0.000000e+00> : vector<8x384xf32>
    %11 = tpu.matmul %9, %10, %cst_8 {dimension_numbers = #tpu.dot_dimension_numbers<[1], [0], [0], [1], [0, 0, 1, 1], [], []>} : vector<8x512xbf16>, vector<512x384xbf16>, vector<8x384xf32> -> vector<8x384xf32>
    %c0_9 = arith.constant 0 : index
    %c0_10 = arith.constant 0 : index
    %12 = vector.load %arg5[%c0_9, %c0_10] : memref<1x384xf32, #tpu.memory_space<vmem>>, vector<1x384xf32>
    %13 = vector.broadcast %12 : vector<1x384xf32> to vector<8x384xf32>
    %14 = arith.addf %11, %13 : vector<8x384xf32>
    %cst_11 = arith.constant 0.000000e+00 : f32
    %15 = vector.broadcast %cst_11 : f32 to vector<8x384xf32>
    %16 = arith.maximumf %14, %15 : vector<8x384xf32>
    %c0_12 = arith.constant 0 : index
    %c0_13 = arith.constant 0 : index
    %17 = vector.load %arg6[%c0_12, %c0_13] : memref<8x384xf32, #tpu.memory_space<vmem>>, vector<8x384xf32>
    tpu.vector_store %arg6[%c0_12, %c0_13], %16 {strides = array<i32>} : memref<8x384xf32, #tpu.memory_space<vmem>>, vector<8x384xf32>,
    return
  }
  func.func @transform_0(%arg0: i32) -> (i32, i32) {
    %c0_i32 = arith.constant 0 : i32
    %c0_i32_0 = arith.constant 0 : i32
    return %arg0, %c0_i32 : i32, i32
  }
  func.func @transform_1(%arg0: i32) -> (i32, i32) {
    %c0_i32 = arith.constant 0 : i32
    %c0_i32_0 = arith.constant 0 : i32
    %c0_i32_1 = arith.constant 0 : i32
    return %c0_i32, %c0_i32_0 : i32, i32
  }
  func.func @transform_2(%arg0: i32) -> (i32, i32) {
    %c0_i32 = arith.constant 0 : i32
    %c0_i32_0 = arith.constant 0 : i32
    %c0_i32_1 = arith.constant 0 : i32
    return %c0_i32, %c0_i32_0 : i32, i32
  }
  func.func @transform_3(%arg0: i32) -> (i32, i32) {
    %c0_i32 = arith.constant 0 : i32
    %c0_i32_0 = arith.constant 0 : i32
    %c0_i32_1 = arith.constant 0 : i32
    return %c0_i32, %c0_i32_0 : i32, i32
  }
  func.func @transform_4(%arg0: i32) -> (i32, i32) {
    %c0_i32 = arith.constant 0 : i32
    %c0_i32_0 = arith.constant 0 : i32
    %c0_i32_1 = arith.constant 0 : i32
    return %c0_i32, %c0_i32_0 : i32, i32
  }
  func.func @transform_5(%arg0: i32) -> (i32, i32) {
    %c0_i32 = arith.constant 0 : i32
    %c0_i32_0 = arith.constant 0 : i32
    return %arg0, %c0_i32 : i32, i32
  }
}

</mosaic_0001>

<bundles_post_ra>
// kernel: simple_fnn_forward.1
= control target key start
LH: loop header
LB: loop body
LE: loop exit
PB: predicated region body
PF: predicated region fallthrough
CT: control target
= control target key end

     0   :  { %10 = vsyncpa [#allocation3], 0  ;;  %s2013_s0 = inlined_call_operand.vmem [shape: f32[8,256], index: 0, kind: input, shape index: {}]   ;;  %s2014_s1 = inlined_call_operand.hbm [shape: bf16[256,512], index: 1, kind: input, shape index: {}]   ;;  %s2015_s2 = inlined_call_operand.vmem [shape: f32[1,512], index: 2, kind: input, shape index: {}]   ;;  %s2016_s3 = inlined_call_operand.hbm [shape: bf16[512,384], index: 3, kind: input, shape index: {}]   ;;  %s2017_s4 = inlined_call_operand.vmem [shape: f32[1,384], index: 4, kind: input, shape index: {}]   ;;  %s2018_s5 = inlined_call_operand.hbm [shape: f32[8,384], index: 5, kind: output, shape index: {}]  }
   0x1   :  { %11 = vsyncpa [#allocation6], 0 }
   0x2   :  { %12 = vsyncpa [#allocation4], 0  ;;  %s1904_s18 = smov [#allocation2]   ;;  %s1832_s22 = scalar_lea.hbm %s2014_s1, 8192 }
   0x3   :  { %s20_s19 = sshll.u32 %s1904_s18, 4  ;;  %p1833_p0 = scmp.ne.s32.totalorder %s2014_s1, %s1832_s22  ;;  %s21_s19 = int_to_ptr.vmem [resolvable:$true] %s20_s19 }
   0x4   :  { %p1836_p1 = scmp.lt.u32.totalorder %s1832_s22, %s2014_s1 }
   0x6   :  { %p1838_p2 = pnand %p1836_p1, %p1833_p0 }
   0x8   :  { %1841 = shalt.err (!%p1838_p2)
}
   0x9   :  { %s1842_s27 = scalar_lea.vmem %s21_s19, 8192  ;;  %p1847_p4 = scmp.lt.s32.totalorder %s21_s19, %s21_s19 }
   0xa   :  { %p1843_p3 = scmp.ne.s32.totalorder %s21_s19, %s1842_s27  ;;  %p1848_p5 = scmp.lt.s32.totalorder %s1842_s27, %s1842_s27 }
   0xc   :  { %p1849_p6 = por %p1848_p5, %p1847_p4 }
   0xe   :  { %p1850_p7 = pnand %p1849_p6, %p1843_p3 }
  0x10   :  { %1853 = shalt.err (!%p1850_p7)
}
  0x11   :  { %s1905_s28 = smov 256   ;;  %s1906_s29 = smov 16  }
  0x12   :  { %26 = dma.hbm_to_vmem [thread:$0]  %s2014_s1, 8192, %s21_s19, [#allocation3], %s1905_s28, %s1905_s28, %s1906_s29  }
  0x13   :  { %s1907_s7 = smov [#allocation5]   ;;  %s1854_s11 = scalar_lea.hbm %s2016_s3, 12288 }
  0x14   :  { %s34_s8 = sshll.u32 %s1907_s7, 4  ;;  %p1855_p8 = scmp.ne.s32.totalorder %s2016_s3, %s1854_s11  ;;  %s35_s8 = int_to_ptr.vmem [resolvable:$true] %s34_s8 }
  0x15   :  { %p1858_p9 = scmp.lt.u32.totalorder %s1854_s11, %s2016_s3 }
  0x17   :  { %p1860_p10 = pnand %p1858_p9, %p1855_p8 }
  0x19   :  { %1863 = shalt.err (!%p1860_p10)
}
  0x1a   :  { %s1864_s16 = scalar_lea.vmem %s35_s8, 12288  ;;  %p1869_p12 = scmp.lt.s32.totalorder %s35_s8, %s35_s8 }
  0x1b   :  { %p1865_p11 = scmp.ne.s32.totalorder %s35_s8, %s1864_s16  ;;  %p1870_p13 = scmp.lt.s32.totalorder %s1864_s16, %s1864_s16 }
  0x1d   :  { %p1871_p0 = por %p1870_p13, %p1869_p12 }
  0x1f   :  { %p1872_p1 = pnand %p1871_p0, %p1865_p11 }
  0x21   :  { %1875 = shalt.err (!%p1872_p1)
}
  0x22   :  { %s1908_s1 = smov 192   ;;  %s1909_s17 = smov 12  }
  0x23   :  { %40 = dma.hbm_to_vmem [thread:$0]  %s2016_s3, 12288, %s35_s8, [#allocation6], %s1908_s1, %s1908_s1, %s1909_s17  }
  0x24   :  { %1898 = dma.done.wait [#allocation3], 8192  }
  0x25   :  { %1899 = vsyncadd [#allocation3], 4294959104 }
  0x26   :  { %1900 = dma.done.wait [#allocation6], 12288  }
  0x27   :  { %1901 = vsyncadd [#allocation6], 4294955008  ;;  %v1608_v0 = vld [vmem:[#allocation2 + $0x4] ss:$16 sps:$4 sm:$0xff]   ;;  %v1610_v1 = vld [vmem:[#allocation2] ss:$16 sps:$4 sm:$0xff]  }
  0x28   :  { %460 = vmatprep.subr.bf16.mxu0 %v1608_v0  ;;  %v1611_v2 = vld [vmem:[#allocation2 + $0x24] ss:$16 sps:$4 sm:$0xff]   ;;  %v1613_v3 = vld [vmem:[#allocation2 + $0x20] ss:$16 sps:$4 sm:$0xff]   ;;  %v1632_v8 = vld [vmem:[#allocation2 + $0xc] ss:$16 sps:$4 sm:$0xff]  }
  0x29   :  { %461 = vmatpush1.bf16.msra.mxu0 %v1610_v1  ;;  %v1614_v4 = vld [vmem:[#allocation2 + $0x44] ss:$16 sps:$4 sm:$0xff]   ;;  %v1616_v5 = vld [vmem:[#allocation2 + $0x40] ss:$16 sps:$4 sm:$0xff]   ;;  %v1636_v10 = vld [vmem:[#allocation2 + $0x8] ss:$16 sps:$4 sm:$0xff]   ;;  %501 = vmatprep.subr.bf16.mxu1 %v1632_v8 }
  0x2a   :  { %462 = vmatprep.subr.bf16.mxu0 %v1611_v2  ;;  %v1617_v6 = vld [vmem:[#allocation2 + $0x64] ss:$16 sps:$4 sm:$0xff]   ;;  %v1619_v7 = vld [vmem:[#allocation2 + $0x60] ss:$16 sps:$4 sm:$0xff]   ;;  %502 = vmatpush1.bf16.msra.mxu1 %v1636_v10  ;;  %v1638_v11 = vld [vmem:[#allocation2 + $0x2c] ss:$16 sps:$4 sm:$0xff]  }
  0x2b   :  { %v1620_v9 = vld [vmem:[#allocation2 + $0x84] ss:$16 sps:$4 sm:$0xff]   ;;  %v1622_v12 = vld [vmem:[#allocation2 + $0x80] ss:$16 sps:$4 sm:$0xff]   ;;  %v1642_v14 = vld [vmem:[#allocation2 + $0x28] ss:$16 sps:$4 sm:$0xff]   ;;  %503 = vmatprep.subr.bf16.mxu1 %v1638_v11 }
  0x2c   :  { %v1623_v13 = vld [vmem:[#allocation2 + $0xa4] ss:$16 sps:$4 sm:$0xff]   ;;  %v1644_v15 = vld [vmem:[#allocation2 + $0x4c] ss:$16 sps:$4 sm:$0xff]   ;;  %v1625_v16 = vld [vmem:[#allocation2 + $0xa0] ss:$16 sps:$4 sm:$0xff]  }
  0x2d   :  { %463 = vmatpush1.bf16.msra.mxu0 %v1613_v3  ;;  %v1648_v17 = vld [vmem:[#allocation2 + $0x48] ss:$16 sps:$4 sm:$0xff]   ;;  %v1650_v18 = vld [vmem:[#allocation2 + $0x6c] ss:$16 sps:$4 sm:$0xff]   ;;  %v1626_v19 = vld [vmem:[#allocation2 + $0xc4] ss:$16 sps:$4 sm:$0xff]  }
  0x2e   :  { %464 = vmatprep.subr.bf16.mxu0 %v1614_v4  ;;  %504 = vmatpush1.bf16.msra.mxu1 %v1642_v14  ;;  %v1654_v20 = vld [vmem:[#allocation2 + $0x68] ss:$16 sps:$4 sm:$0xff]   ;;  %v1628_v21 = vld [vmem:[#allocation2 + $0xc0] ss:$16 sps:$4 sm:$0xff]   ;;  %v1656_v22 = vld [vmem:[#allocation2 + $0x8c] ss:$16 sps:$4 sm:$0xff]  }
  0x2f   :  { %505 = vmatprep.subr.bf16.mxu1 %v1644_v15  ;;  %v1629_v23 = vld [vmem:[#allocation2 + $0xe4] ss:$16 sps:$4 sm:$0xff]   ;;  %v1631_v24 = vld [vmem:[#allocation2 + $0xe0] ss:$16 sps:$4 sm:$0xff]   ;;  %v1660_v25 = vld [vmem:[#allocation2 + $0x88] ss:$16 sps:$4 sm:$0xff]  }
  0x30   :  { %v1662_v26 = vld [vmem:[#allocation2 + $0xac] ss:$16 sps:$4 sm:$0xff]   ;;  %v1634_v27 = vld [vmem:[#allocation2 + $0x104] ss:$16 sps:$4 sm:$0xff]   ;;  %v1666_v28 = vld [vmem:[#allocation2 + $0xa8] ss:$16 sps:$4 sm:$0xff]  }
  0x31   :  { %465 = vmatpush1.bf16.msra.mxu0 %v1616_v5  ;;  %v1637_v29 = vld [vmem:[#allocation2 + $0x100] ss:$16 sps:$4 sm:$0xff]   ;;  %v1640_v30 = vld [vmem:[#allocation2 + $0x124] ss:$16 sps:$4 sm:$0xff]   ;;  %v1668_v31 = vld [vmem:[#allocation2 + $0xcc] ss:$16 sps:$4 sm:$0xff]  }
  0x32   :  { %466 = vmatprep.subr.bf16.mxu0 %v1617_v6  ;;  %506 = vmatpush1.bf16.msra.mxu1 %v1648_v17  ;;  %v51_v32 = vld [vmem:[%s2013_s0 + $0x8] sm:$0xff]  ;;  %v1643_v33 = vld [vmem:[#allocation2 + $0x120] ss:$16 sps:$4 sm:$0xff]   ;;  %v1646_v37 = vld [vmem:[#allocation2 + $0x144] ss:$16 sps:$4 sm:$0xff]  }
  0x33   :  { %507 = vmatprep.subr.bf16.mxu1 %v1650_v18  ;;  %v53_v34 = vpack.c.bf16 %v51_v32, %v51_v32  ;;  %v1672_v35 = vld [vmem:[#allocation2 + $0xc8] ss:$16 sps:$4 sm:$0xff]   ;;  %v1674_v36 = vld [vmem:[#allocation2 + $0xec] ss:$16 sps:$4 sm:$0xff]   ;;  %v1649_v38 = vld [vmem:[#allocation2 + $0x140] ss:$16 sps:$4 sm:$0xff]  }
  0x34   :  { %v1678_v39 = vld [vmem:[#allocation2 + $0xe8] ss:$16 sps:$4 sm:$0xff]   ;;  %v1680_v40 = vld [vmem:[#allocation2 + $0x10c] ss:$16 sps:$4 sm:$0xff]   ;;  %v1652_v41 = vld [vmem:[#allocation2 + $0x164] ss:$16 sps:$4 sm:$0xff]  }
  0x35   :  { %467 = vmatpush1.bf16.msra.mxu0 %v1619_v7  ;;  %492 = vmatprep.mubr.bf16.mxu0 %v53_v34  ;;  %v1655_v42 = vld [vmem:[#allocation2 + $0x160] ss:$16 sps:$4 sm:$0xff]   ;;  %v1682_v43 = vld [vmem:[#allocation2 + $0x108] ss:$16 sps:$4 sm:$0xff]   ;;  %v1683_v44 = vld [vmem:[#allocation2 + $0x12c] ss:$16 sps:$4 sm:$0xff]  }
  0x36   :  { %468 = vmatprep.subr.bf16.mxu0 %v1620_v9  ;;  %508 = vmatpush1.bf16.msra.mxu1 %v1654_v20  ;;  %v1658_v45 = vld [vmem:[#allocation2 + $0x184] ss:$16 sps:$4 sm:$0xff]   ;;  %v1661_v46 = vld [vmem:[#allocation2 + $0x180] ss:$16 sps:$4 sm:$0xff]   ;;  %v1685_v47 = vld [vmem:[#allocation2 + $0x128] ss:$16 sps:$4 sm:$0xff]  }
  0x37   :  { %509 = vmatprep.subr.bf16.mxu1 %v1656_v22  ;;  %533 = vmatprep.mubr.bf16.mxu1 %v53_v34  ;;  %v1686_v48 = vld [vmem:[#allocation2 + $0x14c] ss:$16 sps:$4 sm:$0xff]   ;;  %v1664_v49 = vld [vmem:[#allocation2 + $0x1a4] ss:$16 sps:$4 sm:$0xff]   ;;  %v1667_v50 = vld [vmem:[#allocation2 + $0x1a0] ss:$16 sps:$4 sm:$0xff]  }
  0x38   :  { %v1688_v51 = vld [vmem:[#allocation2 + $0x148] ss:$16 sps:$4 sm:$0xff]   ;;  %v1689_v52 = vld [vmem:[#allocation2 + $0x16c] ss:$16 sps:$4 sm:$0xff]   ;;  %v1670_v53 = vld [vmem:[#allocation2 + $0x1c4] ss:$16 sps:$4 sm:$0xff]  }
  0x39   :  { %469 = vmatpush1.bf16.msra.mxu0 %v1622_v12  ;;  %v1673_v54 = vld [vmem:[#allocation2 + $0x1c0] ss:$16 sps:$4 sm:$0xff]   ;;  %v1691_v55 = vld [vmem:[#allocation2 + $0x168] ss:$16 sps:$4 sm:$0xff]   ;;  %v1692_v56 = vld [vmem:[#allocation2 + $0x18c] ss:$16 sps:$4 sm:$0xff]  }
  0x3a   :  { %470 = vmatprep.subr.bf16.mxu0 %v1623_v13  ;;  %510 = vmatpush1.bf16.msra.mxu1 %v1660_v25  ;;  %v1676_v57 = vld [vmem:[#allocation2 + $0x1e4] ss:$16 sps:$4 sm:$0xff]   ;;  %v1679_v58 = vld [vmem:[#allocation2 + $0x1e0] ss:$16 sps:$4 sm:$0xff]   ;;  %v1694_v60 = vld [vmem:[#allocation2 + $0x188] ss:$16 sps:$4 sm:$0xff]  }
  0x3b   :  { %511 = vmatprep.subr.bf16.mxu1 %v1662_v26  ;;  %v50_v59 = vld [vmem:[%s2013_s0] sm:$0xff]  ;;  %v1695_v61 = vld [vmem:[#allocation2 + $0x1ac] ss:$16 sps:$4 sm:$0xff]   ;;  %v1697_v63 = vld [vmem:[#allocation2 + $0x1a8] ss:$16 sps:$4 sm:$0xff]  }
  0x3c   :  { %v1706_v62 = vld [vmem:[#allocation5 + $0x4] ss:$12 sps:$4 sm:$0xff]   ;;  %v52_v0 = vpack.c.bf16 %v50_v59, %v50_v59  ;;  %v1698_v1 = vld [vmem:[#allocation2 + $0x1cc] ss:$16 sps:$4 sm:$0xff]   ;;  %v1700_v4 = vld [vmem:[#allocation2 + $0x1c8] ss:$16 sps:$4 sm:$0xff]  }
  0x3d   :  { %471 = vmatpush1.bf16.msra.mxu0 %v1625_v16  ;;  %v1704_v2 = vld [vmem:[#allocation5] ss:$12 sps:$4 sm:$0xff]   ;;  %v1709_v3 = vld [vmem:[#allocation5 + $0x1c] ss:$12 sps:$4 sm:$0xff]   ;;  %v1707_v6 = vld [vmem:[#allocation5 + $0x18] ss:$12 sps:$4 sm:$0xff]  }
  0x3e   :  { %472 = vmatprep.subr.bf16.mxu0 %v1626_v19  ;;  %512 = vmatpush1.bf16.msra.mxu1 %v1666_v28  ;;  %v1701_v5 = vld [vmem:[#allocation2 + $0x1ec] ss:$16 sps:$4 sm:$0xff]   ;;  %v1712_v7 = vld [vmem:[#allocation5 + $0x34] ss:$12 sps:$4 sm:$0xff]   ;;  %v1703_v8 = vld [vmem:[#allocation2 + $0x1e8] ss:$16 sps:$4 sm:$0xff]  }
  0x3f   :  { %513 = vmatprep.subr.bf16.mxu1 %v1668_v31  ;;  %v1710_v9 = vld [vmem:[#allocation5 + $0x30] ss:$12 sps:$4 sm:$0xff]   ;;  %v1731_v10 = vld [vmem:[#allocation5 + $0xc8] ss:$12 sps:$4 sm:$0xff]   ;;  %v1715_v11 = vld [vmem:[#allocation5 + $0x4c] ss:$12 sps:$4 sm:$0xff]  }
  0x40   :  { %v1713_v12 = vld [vmem:[#allocation5 + $0x48] ss:$12 sps:$4 sm:$0xff]   ;;  %v1718_v14 = vld [vmem:[#allocation5 + $0x64] ss:$12 sps:$4 sm:$0xff]   ;;  %v1736_v15 = vld [vmem:[#allocation5 + $0xe0] ss:$12 sps:$4 sm:$0xff]  }
  0x41   :  { %473 = vmatpush1.bf16.msra.mxu0 %v1628_v21  ;;  %v1732_v13 = vld [vmem:[#allocation5 + $0x8] ss:$12 sps:$4 sm:$0xff]   ;;  %v1737_v16 = vld [vmem:[#allocation5 + $0x20] ss:$12 sps:$4 sm:$0xff]   ;;  %v1741_v18 = vld [vmem:[#allocation5 + $0xf8] ss:$12 sps:$4 sm:$0xff]  }
  0x42   :  { %474 = vmatprep.subr.bf16.mxu0 %v1629_v23  ;;  %514 = vmatpush1.bf16.msra.mxu1 %v1672_v35  ;;  %v1716_v17 = vld [vmem:[#allocation5 + $0x60] ss:$12 sps:$4 sm:$0xff]   ;;  %v1721_v19 = vld [vmem:[#allocation5 + $0x7c] ss:$12 sps:$4 sm:$0xff]   ;;  %v1742_v20 = vld [vmem:[#allocation5 + $0x38] ss:$12 sps:$4 sm:$0xff]  }
  0x43   :  { %515 = vmatprep.subr.bf16.mxu1 %v1674_v36  ;;  %v1719_v21 = vld [vmem:[#allocation5 + $0x78] ss:$12 sps:$4 sm:$0xff]   ;;  %v1746_v22 = vld [vmem:[#allocation5 + $0x110] ss:$12 sps:$4 sm:$0xff]   ;;  %v1724_v23 = vld [vmem:[#allocation5 + $0x94] ss:$12 sps:$4 sm:$0xff]  }
  0x44   :  { %v1722_v25 = vld [vmem:[#allocation5 + $0x90] ss:$12 sps:$4 sm:$0xff]   ;;  %v1751_v26 = vld [vmem:[#allocation5 + $0x128] ss:$12 sps:$4 sm:$0xff]   ;;  %v1757_v32 = vld [vmem:[#allocation5 + $0x80] ss:$12 sps:$4 sm:$0xff]  }
  0x45   :  { %475 = vmatpush1.bf16.msra.mxu0 %v1631_v24  ;;  %v1747_v24 = vld [vmem:[#allocation5 + $0x50] ss:$12 sps:$4 sm:$0xff]   ;;  %v1752_v28 = vld [vmem:[#allocation5 + $0x68] ss:$12 sps:$4 sm:$0xff]   ;;  %v1733_v35 = vld [vmem:[#allocation5 + $0xd8] ss:$12 sps:$4 sm:$0xff]  }
  0x46   :  { %476 = vmatprep.subr.bf16.mxu0 %v1634_v27  ;;  %516 = vmatpush1.bf16.msra.mxu1 %v1678_v39  ;;  %v1727_v27 = vld [vmem:[#allocation5 + $0xac] ss:$12 sps:$4 sm:$0xff]   ;;  %v1730_v31 = vld [vmem:[#allocation5 + $0xc4] ss:$12 sps:$4 sm:$0xff]   ;;  %v1735_v34 = vld [vmem:[#allocation5 + $0xdc] ss:$12 sps:$4 sm:$0xff]  }
  0x47   :  { %517 = vmatprep.subr.bf16.mxu1 %v1680_v40  ;;  %v1740_v36 = vld [vmem:[#allocation5 + $0xf4] ss:$12 sps:$4 sm:$0xff]   ;;  %v1750_v40 = vld [vmem:[#allocation5 + $0x124] ss:$12 sps:$4 sm:$0xff]  }
  0x48   :  { %v1743_v39 = vld [vmem:[#allocation5 + $0x108] ss:$12 sps:$4 sm:$0xff]  }
  0x49   :  { %477 = vmatpush1.bf16.msra.mxu0 %v1637_v29  ;;  %v1725_v29 = vld [vmem:[#allocation5 + $0xa8] ss:$12 sps:$4 sm:$0xff]  }
  0x4a   :  { %478 = vmatprep.subr.bf16.mxu0 %v1640_v30  ;;  %518 = vmatpush1.bf16.msra.mxu1 %v1682_v43  ;;  %v1756_v30 = vld [vmem:[#allocation5 + $0x140] ss:$12 sps:$4 sm:$0xff]   ;;  %v1753_v43 = vld [vmem:[#allocation5 + $0x138] ss:$12 sps:$4 sm:$0xff]  }
  0x4b   :  { %519 = vmatprep.subr.bf16.mxu1 %v1683_v44  ;;  %v1760_v44 = vld [vmem:[#allocation5 + $0x154] ss:$12 sps:$4 sm:$0xff]  }
  0x4d   :  { %479 = vmatpush1.bf16.msra.mxu0 %v1643_v33  ;;  %v1728_v33 = vld [vmem:[#allocation5 + $0xc0] ss:$12 sps:$4 sm:$0xff]  }
  0x4e   :  { %480 = vmatprep.subr.bf16.mxu0 %v1646_v37  ;;  %520 = vmatpush1.bf16.msra.mxu1 %v1685_v47  ;;  %v1738_v37 = vld [vmem:[#allocation5 + $0xf0] ss:$12 sps:$4 sm:$0xff]   ;;  %v1762_v47 = vld [vmem:[#allocation5 + $0x98] ss:$12 sps:$4 sm:$0xff]  }
  0x4f   :  { %521 = vmatprep.subr.bf16.mxu1 %v1686_v48  ;;  %v1765_v48 = vld [vmem:[#allocation5 + $0x16c] ss:$12 sps:$4 sm:$0xff]  }
  0x51   :  { %481 = vmatpush1.bf16.msra.mxu0 %v1649_v38  ;;  %v1745_v38 = vld [vmem:[#allocation5 + $0x10c] ss:$12 sps:$4 sm:$0xff]  }
  0x52   :  { %482 = vmatprep.subr.bf16.mxu0 %v1652_v41  ;;  %522 = vmatpush1.bf16.msra.mxu1 %v1688_v51  ;;  %v1748_v41 = vld [vmem:[#allocation5 + $0x120] ss:$12 sps:$4 sm:$0xff]   ;;  %v1767_v51 = vld [vmem:[#allocation5 + $0xb0] ss:$12 sps:$4 sm:$0xff]  }
  0x53   :  { %523 = vmatprep.subr.bf16.mxu1 %v1689_v52  ;;  %v1770_v52 = vld [vmem:[#allocation5 + $0x184] ss:$12 sps:$4 sm:$0xff]  }
  0x55   :  { %483 = vmatpush1.bf16.msra.mxu0 %v1655_v42  ;;  %v1755_v42 = vld [vmem:[#allocation5 + $0x13c] ss:$12 sps:$4 sm:$0xff]  }
  0x56   :  { %484 = vmatprep.subr.bf16.mxu0 %v1658_v45  ;;  %524 = vmatpush1.bf16.msra.mxu1 %v1691_v55  ;;  %v1761_v45 = vld [vmem:[#allocation5 + $0x158] ss:$12 sps:$4 sm:$0xff]  }
  0x57   :  { %525 = vmatprep.subr.bf16.mxu1 %v1692_v56 }
  0x59   :  { %485 = vmatpush1.bf16.msra.mxu0 %v1661_v46  ;;  %v1758_v46 = vld [vmem:[#allocation5 + $0x150] ss:$12 sps:$4 sm:$0xff]  }
  0x5a   :  { %486 = vmatprep.subr.bf16.mxu0 %v1664_v49  ;;  %526 = vmatpush1.bf16.msra.mxu1 %v1694_v60  ;;  %v1766_v49 = vld [vmem:[#allocation5 + $0x170] ss:$12 sps:$4 sm:$0xff]  }
  0x5b   :  { %527 = vmatprep.subr.bf16.mxu1 %v1695_v61 }
  0x5d   :  { %487 = vmatpush1.bf16.msra.mxu0 %v1667_v50  ;;  %v1763_v50 = vld [vmem:[#allocation5 + $0x168] ss:$12 sps:$4 sm:$0xff]  }
  0x5e   :  { %488 = vmatprep.subr.bf16.mxu0 %v1670_v53  ;;  %528 = vmatpush1.bf16.msra.mxu1 %v1697_v63  ;;  %v1771_v53 = vld [vmem:[#allocation5 + $0x248] ss:$12 sps:$4 sm:$0xff]  }
  0x5f   :  { %529 = vmatprep.subr.bf16.mxu1 %v1698_v1 }
  0x61   :  { %489 = vmatpush1.bf16.msra.mxu0 %v1673_v54  ;;  %v120_v54 = vlaneseq }
  0x62   :  { %490 = vmatprep.subr.bf16.mxu0 %v1676_v57  ;;  %530 = vmatpush1.bf16.msra.mxu1 %v1700_v4  ;;  %v1977_v57 = vld [vmem:[%s2015_s2] sm:$0xf] }
  0x63   :  { %531 = vmatprep.subr.bf16.mxu1 %v1701_v5  ;;  %v1971_v55 = vshrl.u32 %v120_v54, 7  ;;  %v1811_v54 = vld [vmem:[#allocation5 + $0x258] ss:$12 sps:$4 sm:$0xff]  }
  0x65   :  { %491 = vmatpush1.bf16.msra.mxu0 %v1679_v58  ;;  %v122_v56 = vsub.s32 0, %v1971_v55  ;;  %v126_v58 = vsub.s32 1, %v1971_v55  ;;  %v134_v5 = vsub.s32 3, %v1971_v55 }
  0x66   :  { %1207 = vmatprep.subr.bf16.mxu0 %v1706_v62  ;;  %532 = vmatpush1.bf16.msra.mxu1 %v1703_v8  ;;  %v1772_v8 = vld [vmem:[#allocation5 + $0x188] ss:$12 sps:$4 sm:$0xff]  }
  0x67   :  { %1551 = vmatprep.subr.bf16.mxu1 %v1731_v10  ;;  %v123_v59 = vrot.slane %v1977_v57, %v122_v56  ;;  %v127_v60 = vrot.slane %v1977_v57, %v126_v58  ;;  %v1775_v10 = vld [vmem:[#allocation5 + $0x19c] ss:$12 sps:$4 sm:$0xff]  }
  0x68   :  { %493 = vmatmul.mubr.bf16.vlgmr.msra.gmra.mrb[0].mxu0 %v52_v0 }
  0x69   :  { %1208 = vmatpush1.bf16.msra.mxu0 %v1704_v2  ;;  %534 = vmatmul.mubr.bf16.vlgmr.msra.gmra.mrb[0].mxu1 %v52_v0 }
  0x6a   :  { %1209 = vmatprep.subr.bf16.mxu0 %v1709_v3  ;;  %1552 = vmatpush3.bf16.msra.mxu1 %v1732_v13  ;;  %v1773_v13 = vld [vmem:[#allocation5 + $0x198] ss:$12 sps:$4 sm:$0xff]  }
  0x6b   :  { %1553 = vmatprep.subr.bf16.mxu1 %v1736_v15  ;;  %v1780_v15 = vld [vmem:[#allocation5 + $0x1b4] ss:$12 sps:$4 sm:$0xff]  }
  0x6d   :  { %1210 = vmatpush1.bf16.msra.mxu0 %v1707_v6 }
  0x6e   :  { %1211 = vmatprep.subr.bf16.mxu0 %v1712_v7  ;;  %1554 = vmatpush3.bf16.msra.mxu1 %v1737_v16  ;;  %v1768_v7 = vld [vmem:[#allocation5 + $0x180] ss:$12 sps:$4 sm:$0xff]   ;;  %v1781_v16 = vld [vmem:[#allocation5 + $0x278] ss:$12 sps:$4 sm:$0xff]  }
  0x6f   :  { %1555 = vmatprep.subr.bf16.mxu1 %v1741_v18 }
  0x71   :  { %1212 = vmatpush1.bf16.msra.mxu0 %v1710_v9 }
  0x72   :  { %1213 = vmatprep.subr.bf16.mxu0 %v1715_v11  ;;  %1556 = vmatpush3.bf16.msra.mxu1 %v1742_v20  ;;  %v1776_v11 = vld [vmem:[#allocation5 + $0x260] ss:$12 sps:$4 sm:$0xff]  }
  0x73   :  { %1557 = vmatprep.subr.bf16.mxu1 %v1746_v22  ;;  %v1782_v22 = vld [vmem:[#allocation5 + $0x1b8] ss:$12 sps:$4 sm:$0xff]  }
  0x75   :  { %1214 = vmatpush1.bf16.msra.mxu0 %v1713_v12  ;;  %v135_v12 = vrot.slane %v1977_v57, %v134_v5  ;;  %v1829_v5 = vld [vmem:[#allocation5 + $0x2e8] ss:$12 sps:$4 sm:$0xff]  }
  0x76   :  { %1215 = vmatprep.subr.bf16.mxu0 %v1718_v14  ;;  %1558 = vmatpush3.bf16.msra.mxu1 %v1747_v24  ;;  %v1777_v14 = vld [vmem:[#allocation5 + $0x1a0] ss:$12 sps:$4 sm:$0xff]  }
  0x77   :  { %1559 = vmatprep.subr.bf16.mxu1 %v1751_v26  ;;  %v1785_v24 = vld [vmem:[#allocation5 + $0x1cc] ss:$12 sps:$4 sm:$0xff]  }
  0x79   :  { %1216 = vmatpush1.bf16.msra.mxu0 %v1716_v17 }
  0x7a   :  { %1217 = vmatprep.subr.bf16.mxu0 %v1721_v19  ;;  %1560 = vmatpush3.bf16.msra.mxu1 %v1752_v28  ;;  %v1783_v28 = vld [vmem:[#allocation5 + $0x1c8] ss:$12 sps:$4 sm:$0xff]  }
  0x7b   :  { %1561 = vmatprep.subr.bf16.mxu1 %v1756_v30  ;;  %v1790_v30 = vld [vmem:[#allocation5 + $0x1e4] ss:$12 sps:$4 sm:$0xff]  }
  0x7d   :  { %1218 = vmatpush1.bf16.msra.mxu0 %v1719_v21  ;;  %v1778_v21 = vld [vmem:[#allocation5 + $0x1b0] ss:$12 sps:$4 sm:$0xff]  }
  0x7e   :  { %1219 = vmatprep.subr.bf16.mxu0 %v1724_v23  ;;  %1562 = vmatpush3.bf16.msra.mxu1 %v1757_v32  ;;  %v130_v32 = vsub.s32 2, %v1971_v55 }
  0x7f   :  { %1563 = vmatprep.subr.bf16.mxu1 %v1761_v45  ;;  %v1805_v45 = vld [vmem:[#allocation5 + $0x22c] ss:$12 sps:$4 sm:$0xff]  }
  0x81   :  { %1220 = vmatpush1.bf16.msra.mxu0 %v1722_v25  ;;  %v1786_v25 = vld [vmem:[#allocation5 + $0x290] ss:$12 sps:$4 sm:$0xff]  }
  0x82   :  { %1221 = vmatprep.subr.bf16.mxu0 %v1727_v27  ;;  %1564 = vmatpush3.bf16.msra.mxu1 %v1762_v47 }
  0x83   :  { %1565 = vmatprep.subr.bf16.mxu1 %v1766_v49  ;;  %v1807_v49 = vld [vmem:[#allocation5 + $0x230] ss:$12 sps:$4 sm:$0xff]  }
  0x85   :  { %1222 = vmatpush1.bf16.msra.mxu0 %v1725_v29  ;;  %v1787_v29 = vld [vmem:[#allocation5 + $0x1d0] ss:$12 sps:$4 sm:$0xff]  }
  0x86   :  { %1223 = vmatprep.subr.bf16.mxu0 %v1730_v31  ;;  %1566 = vmatpush3.bf16.msra.mxu1 %v1767_v51  ;;  %v1791_v31 = vld [vmem:[#allocation5 + $0x2a8] ss:$12 sps:$4 sm:$0xff]  }
  0x87   :  { %1573 = vmatprep.subr.bf16.mxu1 %v1771_v53  ;;  %v1813_v53 = vld [vmem:[#allocation5 + $0x25c] ss:$12 sps:$4 sm:$0xff]  }
  0x89   :  { %1224 = vmatpush1.bf16.msra.mxu0 %v1728_v33  ;;  %v1788_v33 = vld [vmem:[#allocation5 + $0x1e0] ss:$12 sps:$4 sm:$0xff]  }
  0x8a   :  { %1225 = vmatprep.subr.bf16.mxu0 %v1735_v34  ;;  %v1792_v34 = vld [vmem:[#allocation5 + $0x1e8] ss:$12 sps:$4 sm:$0xff]  }
  0x8d   :  { %1226 = vmatpush1.bf16.msra.mxu0 %v1733_v35  ;;  %v1795_v35 = vld [vmem:[#allocation5 + $0x1fc] ss:$12 sps:$4 sm:$0xff]  }
  0x8e   :  { %1227 = vmatprep.subr.bf16.mxu0 %v1740_v36  ;;  %v1796_v36 = vld [vmem:[#allocation5 + $0x2c0] ss:$12 sps:$4 sm:$0xff]  }
  0x91   :  { %1228 = vmatpush1.bf16.msra.mxu0 %v1738_v37  ;;  %v131_v37 = vrot.slane %v1977_v57, %v130_v32  ;;  %v1816_v57 = vld [vmem:[#allocation5 + $0x274] ss:$12 sps:$4 sm:$0xff]  }
  0x92   :  { %1229 = vmatprep.subr.bf16.mxu0 %v1745_v38  ;;  %v1793_v38 = vld [vmem:[#allocation5 + $0x1f8] ss:$12 sps:$4 sm:$0xff]  }
  0x95   :  { %1230 = vmatpush1.bf16.msra.mxu0 %v1743_v39  ;;  %v1797_v39 = vld [vmem:[#allocation5 + $0x200] ss:$12 sps:$4 sm:$0xff]  }
  0x96   :  { %1231 = vmatprep.subr.bf16.mxu0 %v1750_v40  ;;  %v1800_v40 = vld [vmem:[#allocation5 + $0x214] ss:$12 sps:$4 sm:$0xff]  }
  0x99   :  { %1232 = vmatpush1.bf16.msra.mxu0 %v1748_v41  ;;  %v1801_v41 = vld [vmem:[#allocation5 + $0x2d8] ss:$12 sps:$4 sm:$0xff]  }
  0x9a   :  { %1233 = vmatprep.subr.bf16.mxu0 %v1755_v42 }
  0x9d   :  { %1234 = vmatpush1.bf16.msra.mxu0 %v1753_v43  ;;  %v1798_v43 = vld [vmem:[#allocation5 + $0x210] ss:$12 sps:$4 sm:$0xff]  }
  0x9e   :  { %1235 = vmatprep.subr.bf16.mxu0 %v1760_v44  ;;  %v1802_v44 = vld [vmem:[#allocation5 + $0x218] ss:$12 sps:$4 sm:$0xff]  }
  0xa1   :  { %1236 = vmatpush1.bf16.msra.mxu0 %v1758_v46  ;;  %v1806_v46 = vld [vmem:[#allocation5 + $0x2f0] ss:$12 sps:$4 sm:$0xff]  }
  0xa2   :  { %1237 = vmatprep.subr.bf16.mxu0 %v1765_v48  ;;  %v1803_v48 = vld [vmem:[#allocation5 + $0x228] ss:$12 sps:$4 sm:$0xff]  }
  0xa5   :  { %1238 = vmatpush1.bf16.msra.mxu0 %v1763_v50  ;;  %v1810_v50 = vld [vmem:[#allocation5 + $0x244] ss:$12 sps:$4 sm:$0xff]  }
  0xa6   :  { %1248 = vmatprep.subr.bf16.mxu0 %v1770_v52  ;;  %v1808_v52 = vld [vmem:[#allocation5 + $0x240] ss:$12 sps:$4 sm:$0xff]  }
 0x13b   :  { %v494_v61 = vpop.f32.mrb[0].mxu0 }
 0x13c   :  { %v495_v62 = vadd.f32 %v494_v61, %v123_v59  ;;  %v496_v63 = vpop.f32.mrb[1].mxu0  ;;  %v535_v17 = vpop.f32.mrb[0].mxu1  ;;  %v1814_v59 = vld [vmem:[#allocation5 + $0x270] ss:$12 sps:$4 sm:$0xff]   ;;  %v1817_v61 = vld [vmem:[#allocation5 + $0x288] ss:$12 sps:$4 sm:$0xff]  }
 0x13d   :  { %v497_v0 = vadd.f32 %v496_v63, %v127_v60  ;;  %v498_v1 = vpop.f32.mrb[2].mxu0  ;;  %v537_v18 = vpop.f32.mrb[1].mxu1  ;;  %v536_v42 = vadd.f32 %v535_v17, %v131_v37  ;;  %v1819_v60 = vld [vmem:[#allocation5 + $0x28c] ss:$12 sps:$4 sm:$0xff]  }
 0x13e   :  { %v542_v2 = vmax.f32 %v495_v62, 0.0  ;;  %v499_v3 = vpop.f32.mrb[3].mxu0  ;;  %v538_v19 = vadd.f32 %v537_v18, %v135_v12  ;;  %v539_v20 = vpop.f32.mrb[2].mxu1  ;;  %v1822_v62 = vld [vmem:[#allocation5 + $0x2a4] ss:$12 sps:$4 sm:$0xff]  }
 0x13f   :  { %v543_v4 = vmax.f32 %v497_v0, 0.0  ;;  %v540_v23 = vpop.f32.mrb[3].mxu1  ;;  %v544_v47 = vmax.f32 %v536_v42, 0.0  ;;  %v1820_v63 = vld [vmem:[#allocation5 + $0x2a0] ss:$12 sps:$4 sm:$0xff]  }
 0x140   :  { %v546_v9 = vpack.c.bf16 %v542_v2, %v542_v2  ;;  %v545_v26 = vmax.f32 %v538_v19, 0.0  ;;  %v1825_v0 = vld [vmem:[#allocation5 + $0x2bc] ss:$12 sps:$4 sm:$0xff]   ;;  %v1823_v1 = vld [vmem:[#allocation5 + $0x2b8] ss:$12 sps:$4 sm:$0xff]  }
 0x141   :  { %v547_v6 = vpack.c.bf16 %v543_v4, %v543_v4  ;;  %v548_v51 = vpack.c.bf16 %v544_v47, %v544_v47  ;;  %v1828_v2 = vld [vmem:[#allocation5 + $0x2d4] ss:$12 sps:$4 sm:$0xff]   ;;  %v1826_v3 = vld [vmem:[#allocation5 + $0x2d0] ss:$12 sps:$4 sm:$0xff]   ;;  %v1831_v4 = vld [vmem:[#allocation5 + $0x2ec] ss:$12 sps:$4 sm:$0xff]  }
 0x142   :  { %v549_v27 = vpack.c.bf16 %v545_v26, %v545_v26 }
 0x143   :  { %1239 = vmatprep.mubr.bf16.mxu0 %v547_v6  ;;  %1321 = vmatprep.mubr.bf16.mxu1 %v547_v6 }
 0x144   :  { %1240 = vmatmul.mubr.bf16.vlgmr.msra.gmra.mrb[4].mxu0 %v546_v9  ;;  %1322 = vmatmul.mubr.bf16.vlgmr.msra.gmra.mrb[4].mxu1 %v546_v9 }
 0x145   :  { %1249 = vmatpush1.bf16.msra.mxu0 %v1768_v7  ;;  %1574 = vmatpush3.bf16.msra.mxu1 %v1772_v8 }
 0x146   :  { %1250 = vmatprep.subr.bf16.mxu0 %v1775_v10  ;;  %1575 = vmatprep.subr.bf16.mxu1 %v1776_v11  ;;  %v678_v11 = vld [vmem:[%s2017_s4] sm:$0x7]  ;;  %s1910_s4 = smov [#allocation7]  }
 0x147   :  { %1361 = vmatprep.mubr.bf16.mxu1 %v549_v27  ;;  %1280 = vmatprep.mubr.bf16.mxu0 %v549_v27  ;;  %v691_v12 = vrot.slane %v678_v11, %v130_v32  ;;  %s1381_s25 = sshll.u32 %s1910_s4, 4  ;;  %s1382_s25 = int_to_ptr.vmem [resolvable:$true] %s1381_s25 }
 0x148   :  { %s1876_s26 = scalar_lea.vmem %s1382_s25, 384  ;;  %p1881_p3 = scmp.lt.s32.totalorder %s1382_s25, %s1382_s25 }
 0x149   :  { %1251 = vmatpush1.bf16.msra.mxu0 %v1773_v13  ;;  %1576 = vmatpush3.bf16.msra.mxu1 %v1777_v14  ;;  %p1877_p2 = scmp.ne.s32.totalorder %s1382_s25, %s1876_s26  ;;  %p1882_p4 = scmp.lt.s32.totalorder %s1876_s26, %s1876_s26 }
 0x14a   :  { %1252 = vmatprep.subr.bf16.mxu0 %v1780_v15  ;;  %1577 = vmatprep.subr.bf16.mxu1 %v1781_v16 }
 0x14b   :  { %p1883_p5 = por %p1882_p4, %p1881_p3 }
 0x14d   :  { %1253 = vmatpush1.bf16.msra.mxu0 %v1778_v21  ;;  %1578 = vmatpush3.bf16.msra.mxu1 %v1782_v22  ;;  %v683_v21 = vrot.slane %v678_v11, %v122_v56  ;;  %v687_v22 = vrot.slane %v678_v11, %v126_v58  ;;  %p1884_p6 = pnand %p1883_p5, %p1877_p2 }
 0x14e   :  { %1254 = vmatprep.subr.bf16.mxu0 %v1785_v24  ;;  %1579 = vmatprep.subr.bf16.mxu1 %v1786_v25 }
 0x151   :  { %1255 = vmatpush1.bf16.msra.mxu0 %v1783_v28  ;;  %1580 = vmatpush3.bf16.msra.mxu1 %v1787_v29 }
 0x152   :  { %1256 = vmatprep.subr.bf16.mxu0 %v1790_v30  ;;  %1581 = vmatprep.subr.bf16.mxu1 %v1791_v31 }
 0x155   :  { %1257 = vmatpush1.bf16.msra.mxu0 %v1788_v33  ;;  %1582 = vmatpush3.bf16.msra.mxu1 %v1792_v34 }
 0x156   :  { %1258 = vmatprep.subr.bf16.mxu0 %v1795_v35  ;;  %1583 = vmatprep.subr.bf16.mxu1 %v1796_v36 }
 0x159   :  { %1259 = vmatpush1.bf16.msra.mxu0 %v1793_v38  ;;  %1584 = vmatpush3.bf16.msra.mxu1 %v1797_v39 }
 0x15a   :  { %1260 = vmatprep.subr.bf16.mxu0 %v1800_v40  ;;  %1585 = vmatprep.subr.bf16.mxu1 %v1801_v41 }
 0x15d   :  { %1261 = vmatpush1.bf16.msra.mxu0 %v1798_v43  ;;  %1586 = vmatpush3.bf16.msra.mxu1 %v1802_v44 }
 0x15e   :  { %1262 = vmatprep.subr.bf16.mxu0 %v1805_v45  ;;  %1587 = vmatprep.subr.bf16.mxu1 %v1806_v46 }
 0x161   :  { %1263 = vmatpush1.bf16.msra.mxu0 %v1803_v48  ;;  %1588 = vmatpush3.bf16.msra.mxu1 %v1807_v49 }
 0x162   :  { %1264 = vmatprep.subr.bf16.mxu0 %v1810_v50 }
 0x164   :  { %1362 = vmatmul.mubr.bf16.vlgmr.msra.gmra.mrb[8].mxu1 %v548_v51 }
 0x165   :  { %1265 = vmatpush1.bf16.msra.mxu0 %v1808_v52 }
 0x166   :  { %1266 = vmatprep.subr.bf16.mxu0 %v1813_v53 }
 0x169   :  { %1267 = vmatpush1.bf16.msra.mxu0 %v1811_v54 }
 0x16a   :  { %1268 = vmatprep.subr.bf16.mxu0 %v1816_v57 }
 0x16d   :  { %1269 = vmatpush1.bf16.msra.mxu0 %v1814_v59 }
 0x16e   :  { %1270 = vmatprep.subr.bf16.mxu0 %v1819_v60 }
 0x171   :  { %1271 = vmatpush1.bf16.msra.mxu0 %v1817_v61 }
 0x172   :  { %1272 = vmatprep.subr.bf16.mxu0 %v1822_v62 }
 0x175   :  { %1273 = vmatpush1.bf16.msra.mxu0 %v1820_v63 }
 0x176   :  { %1274 = vmatprep.subr.bf16.mxu0 %v1825_v0 }
 0x179   :  { %1275 = vmatpush1.bf16.msra.mxu0 %v1823_v1 }
 0x17a   :  { %1276 = vmatprep.subr.bf16.mxu0 %v1828_v2 }
 0x17d   :  { %1277 = vmatpush1.bf16.msra.mxu0 %v1826_v3 }
 0x17e   :  { %1278 = vmatprep.subr.bf16.mxu0 %v1831_v4 }
 0x181   :  { %1279 = vmatpush1.bf16.msra.mxu0 %v1829_v5 }
 0x184   :  { %1281 = vmatmul.mubr.bf16.vlgmr.msra.gmra.mrb[4].mxu0 %v548_v51 }
 0x217   :  { %v1567_v6 = vpop.f32.mrb[4].mxu1 }
 0x218   :  { %v1568_v7 = vpop.f32.mrb[5].mxu1 }
 0x219   :  { %v1569_v8 = vadd.f32 %v1568_v7, %v1567_v6  ;;  %v1570_v9 = vpop.f32.mrb[6].mxu1 }
 0x21a   :  { %v1571_v10 = vpop.f32.mrb[7].mxu1 }
 0x21b   :  { %v1324_v15 = vadd.f32 %v1569_v8, %v691_v12 }
 0x237   :  { %v1589_v13 = vpop.f32.mrb[8].mxu1 }
 0x238   :  { %v1590_v14 = vpop.f32.mrb[9].mxu1 }
 0x239   :  { %v1591_v16 = vadd.f32 %v1590_v14, %v1589_v13  ;;  %v1592_v17 = vpop.f32.mrb[10].mxu1 }
 0x23a   :  { %v1593_v18 = vpop.f32.mrb[11].mxu1 }
 0x23b   :  { %v1364_v19 = vadd.f32 %v1591_v16, %v1324_v15 }
 0x23d   :  { %v1371_v20 = vmax.f32 %v1364_v19, 0.0 }
 0x23f   :  { %1374 = vst [vmem:[#allocation7 + $0x10] sm:$0xff] %v1371_v20 }
 0x257   :  { %v1282_v23 = vpop.f32.mrb[4].mxu0 }
 0x258   :  { %v1595_v24 = vadd.f32 %v1282_v23, %v683_v21  ;;  %v1284_v25 = vpop.f32.mrb[5].mxu0 }
 0x259   :  { %v1596_v26 = vadd.f32 %v1284_v25, %v687_v22  ;;  %v1286_v27 = vpop.f32.mrb[6].mxu0 }
 0x25a   :  { %v1369_v28 = vmax.f32 %v1595_v24, 0.0  ;;  %v1287_v29 = vpop.f32.mrb[7].mxu0 }
 0x25b   :  { %v1370_v30 = vmax.f32 %v1596_v26, 0.0 }
 0x25c   :  { %1372 = vst [vmem:[#allocation7] sm:$0xff] %v1369_v28 }
 0x25d   :  { %1373 = vst [vmem:[#allocation7 + $0x8] sm:$0xff] %v1370_v30 }
 0x25e   :  { %1887 = shalt.err (!%p1884_p6)
}
 0x25f   :  { %s1888_s29 = scalar_lea.hbm %s2018_s5, 384 }
 0x260   :  { %p1889_p7 = scmp.ne.s32.totalorder %s2018_s5, %s1888_s29  ;;  %p1892_p8 = scmp.lt.u32.totalorder %s1888_s29, %s2018_s5 }
 0x262   :  { %p1894_p9 = pnand %p1892_p8, %p1889_p7 }
 0x264   :  { %1897 = shalt.err (!%p1894_p9)
}
 0x265   :  { %1384 = dma.vmem_to_hbm [thread:$0]  %s1382_s25, 384, %s2018_s5, [#allocation4]  }
 0x266   :  { %1902 = dma.done.wait [#allocation4], 384  }
 0x267   :  { %1903 = vsyncadd [#allocation4], 4294966912 }
 0x268   :  { %1388 = vsyncpa [#allocation3], 1 }
 0x269   :  { %1389 = vsyncpa [#allocation6], 1 }
 0x26a   :  { %1390 = vsyncpa [#allocation4], 1 }

</bundles_post_ra>
